<compile_context>
chip_gen: v5e
topology: v5e:2x2
jax: 0.10.0
libtpu: 0.0.40
codegen_flags: <defaults>
</compile_context>

<pallas_src>
import functools

import jax
import jax.numpy as jnp
from jax.experimental import pallas as pl
from jax.experimental.pallas import tpu as pltpu


def _lsce_tile_kernel(logits_ref, target_ref, out_ref, *,
                      n_rows, tile_rows, num_classes, needs_mask):
    """One row tile: write (smooth_partial, nll_partial) for this tile."""
    x = logits_ref[...]                       # (T, C) input dtype (f32 or bf16)
    tgt = target_ref[...]                     # (T, 1) int32
    c = x.shape[-1]

    # Exact in the input dtype (pure selection ops) -> no f32 upcast needed.
    m = jnp.max(x, axis=-1, keepdims=True)                                  # (T, 1)
    col = jax.lax.broadcasted_iota(jnp.int32, (1, c), 1)                    # (1, C) lane iota
    x_t = jnp.sum(jnp.where(col == tgt, x, jnp.zeros((), x.dtype)),
                  axis=-1, keepdims=True)                                   # (T, 1)

    # Single full-width f32 pass: xm = x - m, reused by exp-sum and row-sum.
    m32 = m.astype(jnp.float32)
    xm = x.astype(jnp.float32) - m32                                        # (T, C) f32
    lse = jnp.log(jnp.sum(jnp.exp(xm), axis=-1, keepdims=True))             # (T, 1)

    # sum_j -log_softmax(x)_j == C * lse - sum_j (x_j - m)   (well conditioned)
    smooth_rows = num_classes * lse - jnp.sum(xm, axis=-1, keepdims=True)   # (T, 1)
    # -log_softmax(x)[target] == lse + (m - x[target])
    nll_rows = lse + (m32 - x_t.astype(jnp.float32))                        # (T, 1)

    if needs_mask:
        # Mask padded tail rows of the last tile (undefined block data).
        row_id = (pl.program_id(0) * tile_rows
                  + jax.lax.broadcasted_iota(jnp.int32, (tile_rows, 1), 0))
        valid = row_id < n_rows
        smooth_rows = jnp.where(valid, smooth_rows, 0.0)
        nll_rows = jnp.where(valid, nll_rows, 0.0)

    out_ref[0, 0] = jnp.sum(smooth_rows)
    out_ref[0, 1] = jnp.sum(nll_rows)


def _sublane_multiple(itemsize):
    # Packed dtypes need a larger sublane multiple: bf16 -> 16, int8/fp8 -> 32.
    return {4: 8, 2: 16, 1: 32}.get(itemsize, 8)


def _pick_tile_rows(n, c, itemsize, block_budget_bytes=2 * 1024 * 1024):
    """Largest row tile whose logits block stays under ~2 MiB per buffer."""
    mult = _sublane_multiple(itemsize)
    max_rows = max(mult, block_budget_bytes // max(1, c * itemsize))
    if max_rows >= n:
        return n                       # whole array in one block
    return max(mult, (max_rows // mult) * mult)


def _vmem_limit_bytes(tile_rows, c, itemsize):
    """Double-buffered input block + ~4x tile-sized f32 intermediates + margin."""
    block = tile_rows * c * itemsize
    intermediates = 4 * tile_rows * c * 4
    total = 2 * block + intermediates + (1 << 20)
    # Clamp: never below 4 MiB, never above 48 MiB (v7x has 64 MiB physical).
    return int(min(max(total, 4 << 20), 48 << 20))


def label_smoothing_cross_entropy(logits, target, eps=0.1, reduction="mean",
                                  tile_rows=None):
    """Matches LabelSmoothingCrossEntropy(eps, reduction)(logits, target)."""
    if reduction not in ("mean", "sum"):
        raise ValueError("reduction must be 'mean' or 'sum'")

    n, c = logits.shape
    itemsize = logits.dtype.itemsize
    target2d = target.astype(jnp.int32).reshape(n, 1)

    if tile_rows is None:
        tile_rows = _pick_tile_rows(n, c, itemsize)
    num_tiles = (n + tile_rows - 1) // tile_rows

    kernel = functools.partial(
        _lsce_tile_kernel,
        n_rows=n,
        tile_rows=tile_rows,
        num_classes=float(c),
        needs_mask=(n % tile_rows != 0),
    )

    cost = pl.CostEstimate(
        flops=6 * n * c,
        transcendentals=n * c,
        bytes_accessed=n * c * itemsize + n * 4 + num_tiles * 8,
    )

    partials = pl.pallas_call(
        kernel,
        out_shape=jax.ShapeDtypeStruct((num_tiles, 2), jnp.float32),
        grid=(num_tiles,),
        in_specs=[
            pl.BlockSpec((tile_rows, c), lambda i: (i, 0)),   # logits row tile
            pl.BlockSpec((tile_rows, 1), lambda i: (i, 0)),   # target row tile
        ],
        out_specs=pl.BlockSpec((1, 2), lambda i: (i, 0),
                               memory_space=pltpu.MemorySpace.SMEM),
        compiler_params=pltpu.CompilerParams(
            dimension_semantics=("parallel",),
            vmem_limit_bytes=_vmem_limit_bytes(tile_rows, c, itemsize),
        ),
        cost_estimate=cost,
    )(logits, target2d)

    smooth = jnp.sum(partials[:, 0])
    nll = jnp.sum(partials[:, 1])
    if reduction == "mean":
        smooth = smooth / n
        nll = nll / n
    return smooth * (eps / c) + (1.0 - eps) * nll


def _reference(logits, target, eps=0.1, reduction="mean"):
    # Pure-JAX reference replicating the PyTorch module (computed in f32).
    c = logits.shape[-1]
    logp = jax.nn.log_softmax(logits.astype(jnp.float32), axis=-1)
    nll_per = -jnp.take_along_axis(
        logp, target[:, None].astype(jnp.int32), axis=-1)[:, 0]
    if reduction == "sum":
        loss = -jnp.sum(logp)
        nll = jnp.sum(nll_per)
    else:
        loss = jnp.mean(-jnp.sum(logp, axis=-1))
        nll = jnp.mean(nll_per)
    return loss * eps / c + (1.0 - eps) * nll


if __name__ == "__main__":
    key = jax.random.PRNGKey(0)
    k1, k2, k3, k4, k5, k6 = jax.random.split(key, 6)

    # Case 1: small single-tile shape (batch=8, classes=32), mean reduction.
    N, C = 8, 32
    logits = jax.random.normal(k1, (N, C), dtype=jnp.float32)
    target = jax.random.randint(k2, (N,), 0, C, dtype=jnp.int32)
    out = jax.block_until_ready(
        label_smoothing_cross_entropy(logits, target, eps=0.1, reduction="mean"))
    ref = _reference(logits, target, eps=0.1, reduction="mean")
    assert jnp.allclose(out, ref, rtol=1e-5, atol=1e-5), (out, ref)

    # Case 2: multi-tile path with a padded last tile (N=20, tile_rows=8),
    # exercising the row mask and per-tile partial reduction; sum + mean.
    N2, C2 = 20, 256
    logits2 = jax.random.normal(k3, (N2, C2), dtype=jnp.float32) * 4.0
    target2 = jax.random.randint(k4, (N2,), 0, C2, dtype=jnp.int32)
    for red in ("mean", "sum"):
        out2 = jax.block_until_ready(
            label_smoothing_cross_entropy(logits2, target2, eps=0.1,
                                          reduction=red, tile_rows=8))
        ref2 = _reference(logits2, target2, eps=0.1, reduction=red)
        assert jnp.allclose(out2, ref2, rtol=1e-5, atol=1e-5), (red, out2, ref2)

    # Case 3: bf16 fast path (max/gather in bf16, exp/log in f32), mean.
    N3, C3 = 32, 128
    logits3 = (jax.random.normal(k5, (N3, C3), dtype=jnp.float32)
               .astype(jnp.bfloat16))
    target3 = jax.random.randint(k6, (N3,), 0, C3, dtype=jnp.int32)
    out3 = jax.block_until_ready(
        label_smoothing_cross_entropy(logits3, target3, eps=0.1,
                                      reduction="mean", tile_rows=16))
    ref3 = _reference(logits3, target3, eps=0.1, reduction="mean")
    assert jnp.allclose(out3, ref3, rtol=5e-3, atol=5e-3), (out3, ref3)

    print("KERNEL_OK")
</pallas_src>

<mosaic_0001>
module attributes {stable_mosaic.version = 11 : i64} {
  func.func @_lsce_tile_kernel(%arg0: i32, %arg1: memref<8x32xf32, #tpu.memory_space<vmem>>, %arg2: memref<8x1xi32, #tpu.memory_space<vmem>>, %arg3: memref<1x2xf32, #tpu.memory_space<smem>>) attributes {dimension_semantics = [#tpu.dimension_semantics<parallel>], iteration_bounds = array<i64: 1>, scalar_prefetch = 0 : i64, scratch_operands = 0 : i64, tpu.core_type = #tpu.core_type<tc>, window_params = [{transform_indices = @transform_0, window_bounds = array<i64: 8, 32>}, {transform_indices = @transform_1, window_bounds = array<i64: 8, 1>}, {transform_indices = @transform_2, window_bounds = array<i64: 1, 2>}]} {
    %c0 = arith.constant 0 : index
    %c0_0 = arith.constant 0 : index
    %0 = vector.load %arg1[%c0, %c0_0] : memref<8x32xf32, #tpu.memory_space<vmem>>, vector<8x32xf32>
    %c0_1 = arith.constant 0 : index
    %c0_2 = arith.constant 0 : index
    %1 = vector.load %arg2[%c0_1, %c0_2] : memref<8x1xi32, #tpu.memory_space<vmem>>, vector<8x1xi32>
    %cst = arith.constant dense<0xFF800000> : vector<8xf32>
    %2 = vector.multi_reduction <maximumf>, %0, %cst [1] : vector<8x32xf32> to vector<8xf32>
    %3 = vector.shape_cast %2 : vector<8xf32> to vector<8x1xf32>
    %4 = tpu.iota {dimensions = array<i32: 1>} : vector<1x32xi32>
    %5 = vector.broadcast %4 : vector<1x32xi32> to vector<8x32xi32>
    %6 = vector.broadcast %1 : vector<8x1xi32> to vector<8x32xi32>
    %7 = arith.cmpi eq, %5, %6 : vector<8x32xi32>
    %cst_3 = arith.constant 0.000000e+00 : f32
    %8 = vector.broadcast %cst_3 : f32 to vector<8x32xf32>
    %9 = arith.select %7, %0, %8 : vector<8x32xi1>, vector<8x32xf32>
    %cst_4 = arith.constant dense<0.000000e+00> : vector<8xf32>
    %10 = vector.multi_reduction <add>, %9, %cst_4 [1] : vector<8x32xf32> to vector<8xf32>
    %11 = vector.shape_cast %10 : vector<8xf32> to vector<8x1xf32>
    %12 = vector.broadcast %3 : vector<8x1xf32> to vector<8x32xf32>
    %13 = arith.subf %0, %12 : vector<8x32xf32>
    %14 = math.exp %13 : vector<8x32xf32>
    %cst_5 = arith.constant dense<0.000000e+00> : vector<8xf32>
    %15 = vector.multi_reduction <add>, %14, %cst_5 [1] : vector<8x32xf32> to vector<8xf32>
    %16 = vector.shape_cast %15 : vector<8xf32> to vector<8x1xf32>
    %17 = math.log %16 : vector<8x1xf32>
    %cst_6 = arith.constant 3.200000e+01 : f32
    %18 = vector.broadcast %cst_6 : f32 to vector<8x1xf32>
    %19 = arith.mulf %18, %17 : vector<8x1xf32>
    %cst_7 = arith.constant dense<0.000000e+00> : vector<8xf32>
    %20 = vector.multi_reduction <add>, %13, %cst_7 [1] : vector<8x32xf32> to vector<8xf32>
    %21 = vector.shape_cast %20 : vector<8xf32> to vector<8x1xf32>
    %22 = arith.subf %19, %21 : vector<8x1xf32>
    %23 = arith.subf %3, %11 : vector<8x1xf32>
    %24 = arith.addf %17, %23 : vector<8x1xf32>
    %25 = vector.shape_cast %22 : vector<8x1xf32> to vector<1x8x1xf32>
    %cst_8 = arith.constant dense<0.000000e+00> : vector<1xf32>
    %26 = vector.multi_reduction <add>, %25, %cst_8 [1, 2] : vector<1x8x1xf32> to vector<1xf32>
    %27 = vector.shape_cast %26 : vector<1xf32> to vector<1x1x1xf32>
    %28 = vector.extract %27[0, 0, 0] : f32 from vector<1x1x1xf32>
    %c0_9 = arith.constant 0 : index
    %c0_10 = arith.constant 0 : index
    %29 = memref.load %arg3[%c0_9, %c0_10] : memref<1x2xf32, #tpu.memory_space<smem>>
    memref.store %28, %arg3[%c0_9, %c0_10] : memref<1x2xf32, #tpu.memory_space<smem>>
    %30 = vector.shape_cast %24 : vector<8x1xf32> to vector<1x8x1xf32>
    %cst_11 = arith.constant dense<0.000000e+00> : vector<1xf32>
    %31 = vector.multi_reduction <add>, %30, %cst_11 [1, 2] : vector<1x8x1xf32> to vector<1xf32>
    %32 = vector.shape_cast %31 : vector<1xf32> to vector<1x1x1xf32>
    %33 = vector.extract %32[0, 0, 0] : f32 from vector<1x1x1xf32>
    %c0_12 = arith.constant 0 : index
    %c1 = arith.constant 1 : index
    %34 = memref.load %arg3[%c0_12, %c1] : memref<1x2xf32, #tpu.memory_space<smem>>
    memref.store %33, %arg3[%c0_12, %c1] : memref<1x2xf32, #tpu.memory_space<smem>>
    return
  }
  func.func @transform_0(%arg0: i32) -> (i32, i32) {
    %c0_i32 = arith.constant 0 : i32
    %c0_i32_0 = arith.constant 0 : i32
    return %arg0, %c0_i32 : i32, i32
  }
  func.func @transform_1(%arg0: i32) -> (i32, i32) {
    %c0_i32 = arith.constant 0 : i32
    %c0_i32_0 = arith.constant 0 : i32
    return %arg0, %c0_i32 : i32, i32
  }
  func.func @transform_2(%arg0: i32) -> (i32, i32) {
    %c0_i32 = arith.constant 0 : i32
    %c0_i32_0 = arith.constant 0 : i32
    return %arg0, %c0_i32 : i32, i32
  }
}

</mosaic_0001>

<bundles_post_ra>
// kernel: tpu_custom_call.1
= control target key start
LH: loop header
LB: loop body
LE: loop exit
PB: predicated region body
PF: predicated region fallthrough
CT: control target
= control target key end

     0   :  { %vm14_vm0 = vcmask 261120   ;;  %s138_s0 = inlined_call_operand.vmem [shape: f32[8,32], index: 0, kind: input, shape index: {}]   ;;  %s139_s1 = inlined_call_operand.vmem [shape: s32[8,1], index: 1, kind: input, shape index: {}]   ;;  %s140_s2 = inlined_call_operand.hbm [shape: f32[1,2], index: 2, kind: output, shape index: {}]  }
   0x1   :  { %v12_v0 = vld [vmem:[%s138_s0] sm:$0xff] }
   0x2   :  { %7 = vsyncpa [#allocation3], 0  ;;  %v15_v1 = vsel %vm14_vm0, %v12_v0, -inf  ;;  %v108_v2 = vmov 0   ;;  %v13_v3 = vld [vmem:[%s139_s1] sm:$0xff]  ;;  %v18_v10 = vlaneseq  ;;  %vm43_vm2 = vcmask 7168  }
   0x3   :  { %89 = vset.pattern.permute.xlu0 %v108_v2  ;;  %s73_s13 = sshll.u32 %s140_s2, 4  ;;  %s109_s16 = smov [#allocation2]   ;;  %s74_s13 = int_to_ptr.hbm [resolvable:$true] %s73_s13 }
   0x4   :  { %16 = vmax.xlane.f32.xlu0 %v15_v1  ;;  %v19_v11 = vand.u32 127, %v18_v10 }
  0x18   :  { %21 = vperm.xlu0 %89, %v13_v3  }
  0x77   :  { %v17_v4 = vpop.xlane.xlu0 %16 }
  0x78   :  { %v28_v5 = vsub.f32 %v12_v0, %v17_v4 }
  0x7a   :  { %v37_v6 = vsel %vm14_vm0, %v28_v5, 0.0  ;;  %v29_v7 = vmul.f32 1.442695, %v28_v5 }
  0x7b   :  { %38 = vadd.xlane.f32.xlu2 %v37_v6 }
  0x7c   :  { %90 = vpow2.f32 %v29_v7 }
  0x82   :  { %v91_v8 = vpop.eup %90 }
  0x83   :  { %v31_v9 = vsel %vm14_vm0, %v91_v8, 0.0 }
  0x84   :  { %32 = vadd.xlane.f32.xlu1 %v31_v9 }
  0x8a   :  { %v22_v12 = vpop.permute.xlu0 %21 }
  0x8b   :  { %vm23_vm1 = vcmp.eq.s32.totalorder %v19_v11, %v22_v12 }
  0x8c   :  { %v24_v13 = vsel %vm23_vm1, %v12_v0, 0.0 }
  0x8d   :  { %v25_v14 = vsel %vm14_vm0, %v24_v13, 0.0 }
  0x8e   :  { %26 = vadd.xlane.f32.xlu1 %v25_v14 }
  0xee   :  { %v39_v20 = vpop.xlane.xlu2 %38 }
  0xf7   :  { %v33_v15 = vpop.xlane.xlu1 %32 }
  0xf8   :  { %92 = vlog2.f32 %v33_v15 }
  0xfe   :  { %v93_v16 = vpop.eup %92 }
  0xff   :  { %v35_v17 = vmul.f32 0.6931472, %v93_v16 }
 0x101   :  { %v36_v18 = vmul.f32 32.0, %v35_v17  ;;  %v27_v19 = vpop.xlane.xlu1 %26 }
 0x102   :  { %v41_v21 = vsub.f32 %v17_v4, %v27_v19 }
 0x103   :  { %v40_v22 = vsub.f32 %v36_v18, %v39_v20 }
 0x104   :  { %v42_v23 = vadd.f32 %v41_v21, %v35_v17 }
 0x105   :  { %v44_v24 = vsel %vm43_vm2, %v40_v22, 0.0 }
 0x106   :  { %45 = vadd.xlane.f32.xlu2 %v44_v24  ;;  %v56_v25 = vsel %vm43_vm2, %v42_v23, 0.0 }
 0x107   :  { %57 = vadd.xlane.f32.xlu1 %v56_v25 }
 0x179   :  { %v46_v26 = vpop.xlane.xlu2 %45 }
 0x17a   :  { %v47_v27 = vrot.slane %v46_v26, 4  ;;  %v58_v28 = vpop.xlane.xlu1 %57 }
 0x17b   :  { %v59_v29 = vrot.slane %v58_v28, 4 }
 0x17c   :  { %v48_v30 = vadd.f32 %v47_v27, %v46_v26 }
 0x17d   :  { %v60_v31 = vadd.f32 %v59_v29, %v58_v28 }
 0x17e   :  { %v49_v32 = vrot.slane %v48_v30, 2 }
 0x17f   :  { %v61_v33 = vrot.slane %v60_v31, 2 }
 0x180   :  { %v50_v34 = vadd.f32 %v49_v32, %v48_v30 }
 0x181   :  { %v62_v35 = vadd.f32 %v61_v33, %v60_v31 }
 0x182   :  { %v51_v36 = vrot.slane %v50_v34, 1 }
 0x183   :  { %v63_v37 = vrot.slane %v62_v35, 1 }
 0x184   :  { %v52_v38 = vadd.f32 %v51_v36, %v50_v34 }
 0x185   :  { %v64_v39 = vadd.f32 %v63_v37, %v62_v35 }
 0x186   :  { %83 = vpush %v52_v38 }
 0x187   :  { %85 = vpush %v64_v39 }
 0x1b7   :  { %s84_s14 = spop %83 }
 0x1b8   :  { %55 = sst [smem:[#allocation2]] %s84_s14  ;;  %s86_s15 = spop %85 }
 0x1b9   :  { %67 = sst [smem:[#allocation2 + $0x1]] %s86_s15 }
 0x1ba   :  { %76 = dma.smem_to_hbm %s109_s16, 16, %s74_s13, [#allocation3]  }
 0x1bb   :  { %106 = dma.done.wait [#allocation3], 16  }
 0x1bc   :  { %107 = vsyncadd [#allocation3], 4294967280 }
 0x1bd   :  { %81 = sfence }
 0x1be   :  { %82 = vsyncpa [#allocation3], 1 }

</bundles_post_ra>
